<compile_context>
chip_gen: v6e
topology: v6e:2x2x1
jax: 0.10.0
libtpu: 0.0.40
codegen_flags: <defaults>
</compile_context>

<pallas_src>
import jax
import jax.numpy as jnp
from jax.experimental import pallas as pl
from jax.experimental.pallas import tpu as pltpu


def _round_up(x, m):
    return ((x + m - 1) // m) * m


def compare_kernel(x_ref, w_ref, b_ref, o_ref):
    """One (tm, tn) output block: out = relu(x @ w + b), f32 accumulation."""
    acc = jnp.dot(x_ref[...], w_ref[...], preferred_element_type=jnp.float32)
    acc = acc + b_ref[...].astype(jnp.float32)
    o_ref[...] = jnp.maximum(acc, 0.0).astype(o_ref.dtype)


def prepare_compare_params(weight, bias, *, param_dtype=None):
    """One-time parameter prep (hoist transpose/pad out of the per-call path).

    weight: [H, 2E] (PyTorch nn.Linear layout), bias: [H].
    Returns (w_t, b2, H):
      w_t: [2E, Hp]  (transposed, H padded up to a multiple of 128)
      b2 : [1, Hp]
      H  : original output feature count (for slicing the kernel output).
    """
    H, _ = weight.shape
    if param_dtype is not None:
        weight = weight.astype(param_dtype)
        bias = bias.astype(param_dtype)
    Hp = _round_up(H, 128)
    w_t = weight.T                                    # [2E, H]
    if Hp != H:
        w_t = jnp.pad(w_t, ((0, 0), (0, Hp - H)))
        bias = jnp.pad(bias, (0, Hp - H))
    return w_t, bias.reshape(1, Hp), H


def compare_layer(s, alignment, w_t, b2, out_features, *,
                  row_tile=256, col_tile=256):
    """s, alignment: [B, L, E]; w_t: [2E, Hp]; b2: [1, Hp] -> [B, L, H]."""
    B, L, E = s.shape
    twoE, Hp = w_t.shape
    assert twoE == 2 * E
    assert Hp % 128 == 0
    H = out_features

    N = B * L
    # Single fused-K activation: cat(s, a) along the feature dim. For small E
    # this halves the MXU passes vs two K=E dots.  (For very large E a two-dot
    # split-weight form avoids this concat copy; not needed at these sizes.)
    x = jnp.concatenate([s.reshape(N, E), alignment.reshape(N, E)], axis=-1)
    if x.dtype != w_t.dtype:
        x = x.astype(w_t.dtype)

    # Effective tiles: rows a multiple of 16 (covers f32/bf16 sublane packing),
    # output columns lane-dense (multiple of 128).
    tm = min(row_tile, _round_up(N, 16))
    tn = min(col_tile, Hp)
    assert tm % 16 == 0 and tn % 128 == 0

    Np = _round_up(N, tm)
    if Np != N:
        x = jnp.pad(x, ((0, Np - N), (0, 0)))

    grid = (Np // tm, Hp // tn)

    itemsize = jnp.dtype(x.dtype).itemsize
    # Double-buffered blocks: x, w, bias, out (+ slack); clamp to a safe range
    # that fits every generation (v7x has 64 MiB VMEM per TC).
    blk_bytes = 2 * (tm * twoE + twoE * tn + tn + tm * tn) * itemsize
    vmem_limit = min(max(int(blk_bytes * 1.5) + (4 << 20), 16 << 20), 48 << 20)

    cost = pl.CostEstimate(
        flops=2 * N * twoE * H,
        transcendentals=0,
        bytes_accessed=(N * twoE + twoE * Hp + Hp + N * Hp) * itemsize,
    )

    out = pl.pallas_call(
        compare_kernel,
        out_shape=jax.ShapeDtypeStruct((Np, Hp), s.dtype),
        grid_spec=pl.GridSpec(
            grid=grid,
            in_specs=[
                pl.BlockSpec((tm, twoE), lambda i, j: (i, 0)),  # activations
                pl.BlockSpec((twoE, tn), lambda i, j: (0, j)),  # weight cols
                pl.BlockSpec((1, tn), lambda i, j: (0, j)),     # bias cols
            ],
            out_specs=pl.BlockSpec((tm, tn), lambda i, j: (i, j)),
        ),
        compiler_params=pltpu.CompilerParams(
            dimension_semantics=("parallel", "parallel"),
            vmem_limit_bytes=vmem_limit,
        ),
        cost_estimate=cost,
    )(x, w_t, b2)

    return out[:N, :H].reshape(B, L, H)


def reference(s, alignment, weight, bias):
    x = jnp.concatenate([s, alignment], axis=-1)
    return jax.nn.relu(jnp.einsum("ble,he->blh", x, weight) + bias)


if __name__ == "__main__":
    B, L, E, H = 2, 8, 32, 32

    key = jax.random.PRNGKey(0)
    k_s, k_a, k_w, k_b = jax.random.split(key, 4)

    s = jax.random.normal(k_s, (B, L, E), dtype=jnp.float32)
    alignment = jax.random.normal(k_a, (B, L, E), dtype=jnp.float32)

    # Deterministic Linear(2E, H) params (PyTorch-style uniform init).
    bound = 1.0 / jnp.sqrt(2.0 * E)
    weight = jax.random.uniform(k_w, (H, 2 * E), jnp.float32, -bound, bound)
    bias = jax.random.uniform(k_b, (H,), jnp.float32, -bound, bound)

    # One-time parameter prep (transpose + lane padding), then the call.
    w_t, b2, out_features = prepare_compare_params(weight, bias)

    out = compare_layer(s, alignment, w_t, b2, out_features)
    out = jax.block_until_ready(out)

    ref = reference(s, alignment, weight, bias)
    assert out.shape == (B, L, H)
    assert jnp.allclose(out, ref, atol=1e-5, rtol=1e-5), "mismatch vs reference"

    print("KERNEL_OK")
</pallas_src>

<mosaic_0001>
module attributes {stable_mosaic.version = 11 : i64} {
  func.func @compare_kernel(%arg0: i32, %arg1: i32, %arg2: memref<16x64xf32, #tpu.memory_space<vmem>>, %arg3: memref<64x128xf32, #tpu.memory_space<vmem>>, %arg4: memref<1x128xf32, #tpu.memory_space<vmem>>, %arg5: memref<16x128xf32, #tpu.memory_space<vmem>>) attributes {dimension_semantics = [#tpu.dimension_semantics<parallel>, #tpu.dimension_semantics<parallel>], iteration_bounds = array<i64: 1, 1>, scalar_prefetch = 0 : i64, scratch_operands = 0 : i64, tpu.core_type = #tpu.core_type<tc>, window_params = [{transform_indices = @transform_0, window_bounds = array<i64: 16, 64>}, {transform_indices = @transform_1, window_bounds = array<i64: 64, 128>}, {transform_indices = @transform_2, window_bounds = array<i64: 1, 128>}, {transform_indices = @transform_3, window_bounds = array<i64: 16, 128>}]} {
    %c0 = arith.constant 0 : index
    %c0_0 = arith.constant 0 : index
    %0 = vector.load %arg2[%c0, %c0_0] : memref<16x64xf32, #tpu.memory_space<vmem>>, vector<16x64xf32>
    %c0_1 = arith.constant 0 : index
    %c0_2 = arith.constant 0 : index
    %1 = vector.load %arg3[%c0_1, %c0_2] : memref<64x128xf32, #tpu.memory_space<vmem>>, vector<64x128xf32>
    %cst = arith.constant dense<0.000000e+00> : vector<16x128xf32>
    %2 = tpu.matmul %0, %1, %cst {dimension_numbers = #tpu.dot_dimension_numbers<[1], [0], [0], [1], [0, 0, 1, 1], [], []>} : vector<16x64xf32>, vector<64x128xf32>, vector<16x128xf32> -> vector<16x128xf32>
    %c0_3 = arith.constant 0 : index
    %c0_4 = arith.constant 0 : index
    %3 = vector.load %arg4[%c0_3, %c0_4] : memref<1x128xf32, #tpu.memory_space<vmem>>, vector<1x128xf32>
    %4 = vector.broadcast %3 : vector<1x128xf32> to vector<16x128xf32>
    %5 = arith.addf %2, %4 : vector<16x128xf32>
    %cst_5 = arith.constant 0.000000e+00 : f32
    %6 = vector.broadcast %cst_5 : f32 to vector<16x128xf32>
    %7 = arith.maximumf %5, %6 : vector<16x128xf32>
    %c0_6 = arith.constant 0 : index
    %c0_7 = arith.constant 0 : index
    %8 = vector.load %arg5[%c0_6, %c0_7] : memref<16x128xf32, #tpu.memory_space<vmem>>, vector<16x128xf32>
    tpu.vector_store %arg5[%c0_6, %c0_7], %7 {strides = array<i32>} : memref<16x128xf32, #tpu.memory_space<vmem>>, vector<16x128xf32>,
    return
  }
  func.func @transform_0(%arg0: i32, %arg1: i32) -> (i32, i32) {
    %c0_i32 = arith.constant 0 : i32
    %c0_i32_0 = arith.constant 0 : i32
    return %arg0, %c0_i32 : i32, i32
  }
  func.func @transform_1(%arg0: i32, %arg1: i32) -> (i32, i32) {
    %c0_i32 = arith.constant 0 : i32
    %c0_i32_0 = arith.constant 0 : i32
    return %c0_i32, %arg1 : i32, i32
  }
  func.func @transform_2(%arg0: i32, %arg1: i32) -> (i32, i32) {
    %c0_i32 = arith.constant 0 : i32
    %c0_i32_0 = arith.constant 0 : i32
    return %c0_i32, %arg1 : i32, i32
  }
  func.func @transform_3(%arg0: i32, %arg1: i32) -> (i32, i32) {
    %c0_i32 = arith.constant 0 : i32
    return %arg0, %arg1 : i32, i32
  }
}

</mosaic_0001>

<bundles_post_ra>
// kernel: tpu_custom_call.1
= control target key start
LH: loop header
LB: loop body
LE: loop exit
PB: predicated region body
PF: predicated region fallthrough
CT: control target
= control target key end

     0   :  { %8 = vsyncpa [#allocation3], 0  ;;  %s315_s0 = inlined_call_operand.hbm [shape: f32[16,64], index: 0, kind: input, shape index: {}]   ;;  %s316_s1 = inlined_call_operand.hbm [shape: f32[64,128], index: 1, kind: input, shape index: {}]   ;;  %s317_s2 = inlined_call_operand.vmem [shape: f32[1,128], index: 2, kind: input, shape index: {}]   ;;  %s318_s3 = inlined_call_operand.hbm [shape: f32[16,128], index: 3, kind: output, shape index: {}]  }
   0x1   :  { %9 = vsyncpa [#allocation6], 0 }
   0x2   :  { %10 = vsyncpa [#allocation4], 0  ;;  %s267_s12 = smov [#allocation2]  }
   0x3   :  { %s16_s13 = sshll.u32 %s267_s12, 4  ;;  %s17_s13 = int_to_ptr.vmem [resolvable:$true] %s16_s13 }
   0x4   :  { %s209_s14 = scalar_lea.vmem %s17_s13, 256  ;;  %p214_p1 = scmp.lt.s32.totalorder %s17_s13, %s17_s13 }
   0x5   :  { %p210_p0 = scmp.ne.s32.totalorder %s17_s13, %s209_s14  ;;  %p215_p2 = scmp.lt.s32.totalorder %s209_s14, %s209_s14 }
   0x7   :  { %p216_p3 = por %p215_p2, %p214_p1 }
   0x9   :  { %p217_p4 = pnand %p216_p3, %p210_p0 }
   0xb   :  { %220 = shalt.err (!%p217_p4)
}
   0xc   :  { %s268_s15 = smov 128   ;;  %s269_s16 = smov 8  }
   0xd   :  { %22 = dma.hbm_to_vmem [thread:$0]  %s315_s0, 256, %s17_s13, [#allocation3], %s268_s15, %s268_s15, %s269_s16  }
   0xe   :  { %s270_s19 = smov [#allocation5]  }
   0xf   :  { %s28_s20 = sshll.u32 %s270_s19, 4  ;;  %s29_s20 = int_to_ptr.vmem [resolvable:$true] %s28_s20 }
  0x10   :  { %s229_s21 = scalar_lea.vmem %s29_s20, 1024  ;;  %p234_p6 = scmp.lt.s32.totalorder %s29_s20, %s29_s20 }
  0x11   :  { %p230_p5 = scmp.ne.s32.totalorder %s29_s20, %s229_s21  ;;  %p235_p7 = scmp.lt.s32.totalorder %s229_s21, %s229_s21 }
  0x13   :  { %p236_p8 = por %p235_p7, %p234_p6 }
  0x15   :  { %p237_p9 = pnand %p236_p8, %p230_p5 }
  0x17   :  { %240 = shalt.err (!%p237_p9)
}
  0x18   :  { %34 = dma.hbm_to_vmem [thread:$0]  %s316_s1, 1024, %s29_s20, [#allocation6], %s268_s15, %s268_s15, %s269_s16  }
  0x19   :  { %261 = dma.done.wait [#allocation3], 256  }
  0x1a   :  { %262 = vsyncadd [#allocation3], 4294967040 }
  0x1b   :  { %263 = dma.done.wait [#allocation6], 1024  }
  0x1c   :  { %264 = vsyncadd [#allocation6], 4294966272  ;;  %v52_v0 = vld [vmem:[#allocation5 + $0x38] sm:$0xff]  ;;  %v51_v1 = vld [vmem:[#allocation5 + $0x30] sm:$0xff]  ;;  %vm60_vm0 = vcmask 523264   ;;  %s271_s24 = smov [#allocation7]  }
  0x1d   :  { %177 = vmatprep.subr.mxu0 %v52_v0  ;;  %v50_v2 = vld [vmem:[#allocation5 + $0x28] sm:$0xff]  ;;  %v43_v3 = vld [vmem:[#allocation2] sm:$0xff]  ;;  %v49_v4 = vld [vmem:[#allocation5 + $0x20] sm:$0xff]  ;;  %s151_s25 = sshll.u32 %s271_s24, 4  ;;  %s152_s25 = int_to_ptr.vmem [resolvable:$true] %s151_s25 }
  0x1e   :  { %178 = vmatpush3.msra.mxu0 %v52_v0  ;;  %193 = vmatprep.mubr.msk.f32.mxu0 %vm60_vm0, %v43_v3  ;;  %v48_v5 = vld [vmem:[#allocation5 + $0x18] sm:$0xff]  ;;  %v47_v6 = vld [vmem:[#allocation5 + $0x10] sm:$0xff]  ;;  %v46_v7 = vld [vmem:[#allocation5 + $0x8] sm:$0xff]  ;;  %s241_s26 = scalar_lea.vmem %s152_s25, 256  ;;  %p246_p11 = scmp.lt.s32.totalorder %s152_s25, %s152_s25 }
  0x1f   :  { %179 = vmatprep.subr.mxu0 %v51_v1  ;;  %v45_v8 = vld [vmem:[#allocation5] sm:$0xff]  ;;  %v44_v9 = vld [vmem:[#allocation2 + $0x8] sm:$0xff]  ;;  %v164_v10 = vld [vmem:[%s317_s2] ss:$0 sm:$0xff]  ;;  %p242_p10 = scmp.ne.s32.totalorder %s152_s25, %s241_s26  ;;  %p247_p12 = scmp.lt.s32.totalorder %s241_s26, %s241_s26 }
  0x20   :  { %180 = vmatpush3.msra.mxu0 %v51_v1 }
  0x21   :  { %181 = vmatprep.subr.mxu0 %v50_v2  ;;  %p248_p13 = por %p247_p12, %p246_p11 }
  0x22   :  { %182 = vmatpush3.msra.mxu0 %v50_v2 }
  0x23   :  { %183 = vmatprep.subr.mxu0 %v49_v4  ;;  %p249_p0 = pnand %p248_p13, %p242_p10 }
  0x24   :  { %184 = vmatpush3.msra.mxu0 %v49_v4 }
  0x25   :  { %185 = vmatprep.subr.mxu0 %v48_v5 }
  0x26   :  { %186 = vmatpush3.msra.mxu0 %v48_v5 }
  0x27   :  { %187 = vmatprep.subr.mxu0 %v47_v6 }
  0x28   :  { %188 = vmatpush3.msra.mxu0 %v47_v6 }
  0x29   :  { %189 = vmatprep.subr.mxu0 %v46_v7 }
  0x2a   :  { %190 = vmatpush3.msra.mxu0 %v46_v7 }
  0x2b   :  { %191 = vmatprep.subr.mxu0 %v45_v8 }
  0x2c   :  { %192 = vmatpush3.msra.mxu0 %v45_v8 }
  0x2d   :  { %194 = vmatmul.mubr.msk.f32.vlgmr.msra.gmra.mxu0 %vm60_vm0, %v44_v9 }
  0xed   :  { %v195_v11 = vpop.f32.mrf.mxu0 }
  0xee   :  { %v139_v12 = vadd.f32 %v195_v11, %v164_v10 }
  0xef   :  { %v133_v13 = vpop.f32.mrf.mxu0 }
  0xf0   :  { %v143_v14 = vmax.f32 %v139_v12, 0.0  ;;  %v134_v15 = vadd.f32 %v164_v10, %v133_v13 }
  0xf2   :  { %145 = vst [vmem:[#allocation7 + $0x8] sm:$0xff] %v143_v14  ;;  %v142_v16 = vmax.f32 %v134_v15, 0.0 }
  0xf4   :  { %144 = vst [vmem:[#allocation7] sm:$0xff] %v142_v16 }
  0xf5   :  { %252 = shalt.err (!%p249_p0)
}
  0xf6   :  { %157 = dma.vmem_to_hbm [thread:$0]  %s152_s25, 256, %s318_s3, [#allocation4], %s268_s15, %s268_s15, %s269_s16  }
  0xf7   :  { %265 = dma.done.wait [#allocation4], 256  }
  0xf8   :  { %266 = vsyncadd [#allocation4], 4294967040 }
  0xf9   :  { %161 = vsyncpa [#allocation3], 1 }
  0xfa   :  { %162 = vsyncpa [#allocation6], 1 }
  0xfb   :  { %163 = vsyncpa [#allocation4], 1 }

</bundles_post_ra>
